<compile_context>
chip_gen: v5e
topology: v5e:2x2
jax: 0.10.0
libtpu: 0.0.40
codegen_flags: <defaults>
</compile_context>

<pallas_src>
from functools import partial

import jax
import jax.numpy as jnp
from jax.experimental import pallas as pl
from jax.experimental.pallas import tpu as pltpu

LANE = 128   # TPU lane width; hidden/output dims pad to one lane tile.
D_IN = 16    # padded (input_size + ones column) feature dim.
             # 16 = bf16 sublane tile, so every slab slice is tile-aligned.


def _actor_critic_kernel(x_ref, slab_ref, out_ref):
    # x_ref:    [tb, D_IN]              bf16, col `input_size` holds 1.0 on real rows
    # slab_ref: [D_IN + 2*LANE, LANE]   bf16, packed [W1; W2; W3] with biases folded
    # out_ref:  [tb, LANE]              f32,  col 0 = value, cols 1..OUT = mu, rest 0
    x = x_ref[...]
    w1 = slab_ref[0:D_IN, :]                        # [16, 128]   (16-aligned)
    w2 = slab_ref[D_IN:D_IN + LANE, :]              # [128, 128]  (16-aligned)
    w3 = slab_ref[D_IN + LANE:D_IN + 2 * LANE, :]   # [128, 128]  (16-aligned)

    h = jnp.maximum(jnp.dot(x, w1, preferred_element_type=jnp.float32), 0.0)
    h = jnp.maximum(
        jnp.dot(h.astype(jnp.bfloat16), w2, preferred_element_type=jnp.float32), 0.0)
    out_ref[...] = jnp.dot(
        h.astype(jnp.bfloat16), w3, preferred_element_type=jnp.float32
    ).astype(out_ref.dtype)


def pack_params(p, input_size, hidden_size, output_size):
    """Pack all 12 Linear params (biases folded) into one bf16 [D_IN+2*128, 128] slab.

    Call this ONCE per parameter update (outside the per-step hot path) and pass
    the resulting slab to `actor_critic_forward`.
    """
    HID = hidden_size
    if input_size + 1 > D_IN:
        raise ValueError(f"input_size={input_size} exceeds packed limit {D_IN - 1}")
    if 2 * HID + 1 > LANE:
        raise ValueError(f"hidden_size={HID} exceeds packed limit {(LANE - 1) // 2}")
    if 1 + output_size > LANE:
        raise ValueError(f"output_size={output_size} exceeds packed limit {LANE - 1}")

    # Layer 1: [D_IN, LANE].  Column 2*HID is a constant-1 channel that carries
    # the "ones" needed to fold layer-2/3 biases through the ReLUs.
    w1 = jnp.zeros((D_IN, LANE), jnp.float32)
    w1 = w1.at[:input_size, :HID].set(p["cw1"])
    w1 = w1.at[:input_size, HID:2 * HID].set(p["aw1"])
    w1 = w1.at[input_size, :HID].set(p["cb1"])
    w1 = w1.at[input_size, HID:2 * HID].set(p["ab1"])
    w1 = w1.at[input_size, 2 * HID].set(1.0)

    # Layer 2: block-diagonal + bias row + ones-channel pass-through.
    w2 = jnp.zeros((LANE, LANE), jnp.float32)
    w2 = w2.at[:HID, :HID].set(p["cw2"])
    w2 = w2.at[HID:2 * HID, HID:2 * HID].set(p["aw2"])
    w2 = w2.at[2 * HID, :HID].set(p["cb2"])
    w2 = w2.at[2 * HID, HID:2 * HID].set(p["ab2"])
    w2 = w2.at[2 * HID, 2 * HID].set(1.0)

    # Layer 3: critic head -> col 0, actor head -> cols 1..OUT, bias row folded.
    w3 = jnp.zeros((LANE, LANE), jnp.float32)
    w3 = w3.at[:HID, 0:1].set(p["cw3"])
    w3 = w3.at[HID:2 * HID, 1:1 + output_size].set(p["aw3"])
    w3 = w3.at[2 * HID, 0].set(p["cb3"][0])
    w3 = w3.at[2 * HID, 1:1 + output_size].set(p["ab3"])

    return jnp.concatenate([w1, w2, w3], axis=0).astype(jnp.bfloat16)


def _choose_block_rows(batch):
    """One block per call for small/medium batches; 512-row blocks for huge ones."""
    bp8 = max(8, ((batch + 7) // 8) * 8)
    if bp8 <= 2048:
        return bp8          # grid=(1,): no per-step overhead, MXU sees the whole batch
    return 512              # large rollouts: 512-row blocks, shardable across v7x TCs


@partial(jax.jit, static_argnames=("output_size", "block_rows"))
def _forward_impl(x, slab, log_std, *, output_size, block_rows):
    batch, input_size = x.shape
    batch_pad = ((batch + block_rows - 1) // block_rows) * block_rows

    # Build bf16 input: [x | 1] on real rows, all-zero padded rows (hygiene:
    # padded rows flow zeros through the net instead of bias garbage).
    x_b = jnp.concatenate(
        [x.astype(jnp.bfloat16), jnp.ones((batch, 1), jnp.bfloat16)], axis=1)
    x_in = jnp.pad(x_b, ((0, batch_pad - batch), (0, D_IN - (input_size + 1))))

    grid = (batch_pad // block_rows,)
    cost = pl.CostEstimate(
        flops=2 * batch_pad * (D_IN * LANE + 2 * LANE * LANE),
        transcendentals=0,
        bytes_accessed=x_in.size * 2 + slab.size * 2 + batch_pad * LANE * 4,
    )

    out = pl.pallas_call(
        _actor_critic_kernel,
        out_shape=jax.ShapeDtypeStruct((batch_pad, LANE), jnp.float32),
        grid=grid,
        in_specs=[
            pl.BlockSpec((block_rows, D_IN), lambda i: (i, 0)),
            pl.BlockSpec((D_IN + 2 * LANE, LANE), lambda i: (0, 0)),
        ],
        out_specs=pl.BlockSpec((block_rows, LANE), lambda i: (i, 0)),
        compiler_params=pltpu.CompilerParams(dimension_semantics=("parallel",)),
        cost_estimate=cost,
    )(x_in, slab)

    value = out[:batch, 0:1]
    mu = out[:batch, 1:1 + output_size]
    # std = log_std.exp().expand_as(mu): batch-independent, computed in f32 outside.
    std = jnp.broadcast_to(jnp.exp(log_std.astype(jnp.float32)), mu.shape)
    return mu, std, value


def actor_critic_forward(x, slab, log_std, *, output_size, block_rows=None):
    """Full ActorCritic forward (mu, std, value) from a pre-packed weight slab."""
    if block_rows is None:
        block_rows = _choose_block_rows(x.shape[0])
    return _forward_impl(x, slab, log_std,
                         output_size=output_size, block_rows=block_rows)


def init_params(key, input_size, output_size, hidden_size=10, std=0.0):
    """Matches init_weights: W ~ N(0, 0.1), b = 1.0; log_std = std * ones."""
    keys = jax.random.split(key, 6)

    def lin(k, fan_in, fan_out):
        w = 0.1 * jax.random.normal(k, (fan_in, fan_out), dtype=jnp.float32)
        b = jnp.ones((fan_out,), dtype=jnp.float32)
        return w, b

    cw1, cb1 = lin(keys[0], input_size, hidden_size)
    cw2, cb2 = lin(keys[1], hidden_size, hidden_size)
    cw3, cb3 = lin(keys[2], hidden_size, 1)
    aw1, ab1 = lin(keys[3], input_size, hidden_size)
    aw2, ab2 = lin(keys[4], hidden_size, hidden_size)
    aw3, ab3 = lin(keys[5], hidden_size, output_size)
    log_std = jnp.ones((1, output_size), dtype=jnp.float32) * std

    return dict(
        cw1=cw1, cb1=cb1, cw2=cw2, cb2=cb2, cw3=cw3, cb3=cb3,
        aw1=aw1, ab1=ab1, aw2=aw2, ab2=ab2, aw3=aw3, ab3=ab3,
        log_std=log_std,
    )


def _reference_forward(x, p):
    """Plain-JAX f32 reference for verification (unfused)."""
    h = jnp.maximum(x @ p["cw1"] + p["cb1"], 0.0)
    h = jnp.maximum(h @ p["cw2"] + p["cb2"], 0.0)
    value = h @ p["cw3"] + p["cb3"]
    a = jnp.maximum(x @ p["aw1"] + p["ab1"], 0.0)
    a = jnp.maximum(a @ p["aw2"] + p["ab2"], 0.0)
    mu = a @ p["aw3"] + p["ab3"]
    std = jnp.broadcast_to(jnp.exp(p["log_std"]), mu.shape)
    return mu, std, value


if __name__ == "__main__":
    # Pendulum-v1: observation dim 3, action dim 1; hidden_size=10, std=0.0.
    batch, input_size, output_size, hidden_size = 64, 3, 1, 10

    key = jax.random.PRNGKey(0)
    pkey, xkey = jax.random.split(key)
    params = init_params(pkey, input_size, output_size, hidden_size, std=0.0)
    x = jax.random.normal(xkey, (batch, input_size), dtype=jnp.float32)

    # Slab packing happens ONCE per parameter update, outside the hot path.
    slab = pack_params(params, input_size, hidden_size, output_size)
    slab = jax.block_until_ready(slab)

    mu, std, value = actor_critic_forward(x, slab, params["log_std"],
                                          output_size=output_size)
    jax.block_until_ready((mu, std, value))

    mu_ref, std_ref, value_ref = _reference_forward(x, params)
    assert mu.shape == (batch, output_size)
    assert std.shape == (batch, output_size)
    assert value.shape == (batch, 1)
    # bf16 MXU inputs with f32 accumulation -> loosened tolerance vs. f32 reference.
    assert jnp.allclose(mu, mu_ref, atol=5e-2, rtol=5e-2), float(jnp.abs(mu - mu_ref).max())
    assert jnp.allclose(std, std_ref, atol=1e-5), float(jnp.abs(std - std_ref).max())
    assert jnp.allclose(value, value_ref, atol=5e-2, rtol=5e-2), float(jnp.abs(value - value_ref).max())

    print("KERNEL_OK")
</pallas_src>

<mosaic_0001>
module attributes {stable_mosaic.version = 11 : i64} {
  func.func @_actor_critic_kernel(%arg0: i32, %arg1: memref<64x16xbf16, #tpu.memory_space<vmem>>, %arg2: memref<272x128xbf16, #tpu.memory_space<vmem>>, %arg3: memref<64x128xf32, #tpu.memory_space<vmem>>) attributes {dimension_semantics = [#tpu.dimension_semantics<parallel>], iteration_bounds = array<i64: 1>, scalar_prefetch = 0 : i64, scratch_operands = 0 : i64, tpu.core_type = #tpu.core_type<tc>, window_params = [{transform_indices = @transform_0, window_bounds = array<i64: 64, 16>}, {pipeline_mode = #tpu.pipeline_mode<synchronous>, transform_indices = @transform_1, window_bounds = array<i64: 272, 128>}, {transform_indices = @transform_2, window_bounds = array<i64: 64, 128>}]} {
    %c0 = arith.constant 0 : index
    %c0_0 = arith.constant 0 : index
    %0 = vector.load %arg1[%c0, %c0_0] : memref<64x16xbf16, #tpu.memory_space<vmem>>, vector<64x16xbf16>
    %c0_1 = arith.constant 0 : index
    %c0_2 = arith.constant 0 : index
    %1 = vector.load %arg2[%c0_1, %c0_2] : memref<272x128xbf16, #tpu.memory_space<vmem>>, vector<16x128xbf16>
    %c16 = arith.constant 16 : index
    %c0_3 = arith.constant 0 : index
    %2 = vector.load %arg2[%c16, %c0_3] : memref<272x128xbf16, #tpu.memory_space<vmem>>, vector<128x128xbf16>
    %c144 = arith.constant 144 : index
    %c0_4 = arith.constant 0 : index
    %3 = vector.load %arg2[%c144, %c0_4] : memref<272x128xbf16, #tpu.memory_space<vmem>>, vector<128x128xbf16>
    %cst = arith.constant dense<0.000000e+00> : vector<64x128xf32>
    %4 = tpu.matmul %0, %1, %cst {dimension_numbers = #tpu.dot_dimension_numbers<[1], [0], [0], [1], [0, 0, 1, 1], [], []>} : vector<64x16xbf16>, vector<16x128xbf16>, vector<64x128xf32> -> vector<64x128xf32>
    %cst_5 = arith.constant 0.000000e+00 : f32
    %5 = vector.broadcast %cst_5 : f32 to vector<64x128xf32>
    %6 = arith.maximumf %4, %5 : vector<64x128xf32>
    %7 = arith.truncf %6 : vector<64x128xf32> to vector<64x128xbf16>
    %cst_6 = arith.constant dense<0.000000e+00> : vector<64x128xf32>
    %8 = tpu.matmul %7, %2, %cst_6 {dimension_numbers = #tpu.dot_dimension_numbers<[1], [0], [0], [1], [0, 0, 1, 1], [], []>} : vector<64x128xbf16>, vector<128x128xbf16>, vector<64x128xf32> -> vector<64x128xf32>
    %cst_7 = arith.constant 0.000000e+00 : f32
    %9 = vector.broadcast %cst_7 : f32 to vector<64x128xf32>
    %10 = arith.maximumf %8, %9 : vector<64x128xf32>
    %11 = arith.truncf %10 : vector<64x128xf32> to vector<64x128xbf16>
    %cst_8 = arith.constant dense<0.000000e+00> : vector<64x128xf32>
    %12 = tpu.matmul %11, %3, %cst_8 {dimension_numbers = #tpu.dot_dimension_numbers<[1], [0], [0], [1], [0, 0, 1, 1], [], []>} : vector<64x128xbf16>, vector<128x128xbf16>, vector<64x128xf32> -> vector<64x128xf32>
    %c0_9 = arith.constant 0 : index
    %c0_10 = arith.constant 0 : index
    %13 = vector.load %arg3[%c0_9, %c0_10] : memref<64x128xf32, #tpu.memory_space<vmem>>, vector<64x128xf32>
    tpu.vector_store %arg3[%c0_9, %c0_10], %12 {strides = array<i32>} : memref<64x128xf32, #tpu.memory_space<vmem>>, vector<64x128xf32>,
    return
  }
  func.func @transform_0(%arg0: i32) -> (i32, i32) {
    %c0_i32 = arith.constant 0 : i32
    %c0_i32_0 = arith.constant 0 : i32
    return %arg0, %c0_i32 : i32, i32
  }
  func.func @transform_1(%arg0: i32) -> (i32, i32) {
    %c0_i32 = arith.constant 0 : i32
    %c0_i32_0 = arith.constant 0 : i32
    %c0_i32_1 = arith.constant 0 : i32
    return %c0_i32, %c0_i32_0 : i32, i32
  }
  func.func @transform_2(%arg0: i32) -> (i32, i32) {
    %c0_i32 = arith.constant 0 : i32
    %c0_i32_0 = arith.constant 0 : i32
    return %arg0, %c0_i32 : i32, i32
  }
}

</mosaic_0001>

<bundles_post_ra>
// kernel: _forward_impl.1
= control target key start
LH: loop header
LB: loop body
LE: loop exit
PB: predicated region body
PF: predicated region fallthrough
CT: control target
= control target key end

     0   :  { %7 = vsyncpa [#allocation3], 0  ;;  %s483_s12 = smov [#allocation2]   ;;  %s484_s14 = smov 64   ;;  %s544_s0 = inlined_call_operand.vmem [shape: bf16[64,16], index: 0, kind: input, shape index: {}]   ;;  %s545_s1 = inlined_call_operand.hbm [shape: bf16[272,128], index: 1, kind: input, shape index: {}]   ;;  %s546_s2 = inlined_call_operand.vmem [shape: f32[64,128], index: 2, kind: output, shape index: {}]  }
   0x1   :  { %s14_s11 = sshll.u32 %s545_s1, 4  ;;  %s16_s13 = sshll.u32 %s483_s12, 4  ;;  %s15_s11 = int_to_ptr.hbm [resolvable:$true] %s14_s11  ;;  %s17_s13 = int_to_ptr.vmem [resolvable:$true] %s16_s13 }
   0x2   :  { %s485_s15 = smov 4  }
   0x3   :  { %22 = dma.hbm_to_vmem [thread:$0]  %s15_s11, 2176, %s17_s13, [#allocation3], %s484_s14, %s484_s14, %s485_s15  }
   0x4   :  { %481 = dma.done.wait [#allocation3], 2176  }
   0x5   :  { %482 = vsyncadd [#allocation3], 4294965120  ;;  %v421_v0 = vld [vmem:[#allocation2] sm:$0xff]  ;;  %vm96_vm0 = vcmask 130048   ;;  %v418_v2 = vld [vmem:[%s544_s0 + $0x8] sm:$0xff] }
   0x6   :  { %v417_v1 = vld [vmem:[%s544_s0] sm:$0xff]  ;;  %116 = vmatpush.bf16.msra.mxu0 %v421_v0  ;;  %v428_v4 = vld [vmem:[#allocation2 + $0x38] sm:$0xff]  ;;  %v427_v5 = vld [vmem:[#allocation2 + $0x30] sm:$0xff] }
   0x7   :  { %v429_v3 = vld [vmem:[#allocation2 + $0x40] sm:$0xff]  ;;  %v426_v6 = vld [vmem:[#allocation2 + $0x28] sm:$0xff]  ;;  %v419_v7 = vld [vmem:[%s544_s0 + $0x10] sm:$0xff] }
   0x8   :  { %198 = vmatpush.bf16.msra.mxu1 %v429_v3  ;;  %438 = vmatpush.bf16.msra.mxu3 %v429_v3  ;;  %v425_v8 = vld [vmem:[#allocation2 + $0x20] sm:$0xff]  ;;  %v420_v9 = vld [vmem:[%s544_s0 + $0x18] sm:$0xff]  ;;  %v423_v11 = vld [vmem:[#allocation2 + $0x10] sm:$0xff] }
   0x9   :  { %349 = vmatmul.msk.bf16.vlgmr.msra.gmra.mxu0 %vm96_vm0, %v417_v1  ;;  %v424_v10 = vld [vmem:[#allocation2 + $0x18] sm:$0xff]  ;;  %v422_v12 = vld [vmem:[#allocation2 + $0x8] sm:$0xff]  ;;  %v437_v23 = vld [vmem:[#allocation2 + $0x80] sm:$0xff] }
   0xa   :  { %v436_v24 = vld [vmem:[#allocation2 + $0x78] sm:$0xff]  ;;  %446 = vmatpush.bf16.msra.mxu2 %v437_v23  ;;  %v435_v26 = vld [vmem:[#allocation2 + $0x70] sm:$0xff]  ;;  %v434_v27 = vld [vmem:[#allocation2 + $0x68] sm:$0xff] }
   0xb   :  { %v433_v32 = vld [vmem:[#allocation2 + $0x60] sm:$0xff]  ;;  %v432_v38 = vld [vmem:[#allocation2 + $0x58] sm:$0xff]  ;;  %v431_v39 = vld [vmem:[#allocation2 + $0x50] sm:$0xff] }
   0xc   :  { %199 = vmatpush.bf16.msra.mxu1 %v428_v4  ;;  %439 = vmatpush.bf16.msra.mxu3 %v428_v4  ;;  %v430_v40 = vld [vmem:[#allocation2 + $0x48] sm:$0xff] }
   0xe   :  { %447 = vmatpush.bf16.msra.mxu2 %v436_v24 }
  0x10   :  { %200 = vmatpush.bf16.msra.mxu1 %v427_v5  ;;  %440 = vmatpush.bf16.msra.mxu3 %v427_v5 }
  0x12   :  { %448 = vmatpush.bf16.msra.mxu2 %v435_v26 }
  0x14   :  { %201 = vmatpush.bf16.msra.mxu1 %v426_v6  ;;  %441 = vmatpush.bf16.msra.mxu3 %v426_v6 }
  0x16   :  { %449 = vmatpush.bf16.msra.mxu2 %v434_v27 }
  0x18   :  { %202 = vmatpush.bf16.msra.mxu1 %v425_v8  ;;  %442 = vmatpush.bf16.msra.mxu3 %v425_v8 }
  0x19   :  { %350 = vmatmul.msk.bf16.gmra.mxu0 %vm96_vm0, %v418_v2 }
  0x1a   :  { %450 = vmatpush.bf16.msra.mxu2 %v433_v32 }
  0x1c   :  { %203 = vmatpush.bf16.msra.mxu1 %v424_v10  ;;  %443 = vmatpush.bf16.msra.mxu3 %v424_v10 }
  0x1e   :  { %451 = vmatpush.bf16.msra.mxu2 %v432_v38 }
  0x20   :  { %204 = vmatpush.bf16.msra.mxu1 %v423_v11  ;;  %444 = vmatpush.bf16.msra.mxu3 %v423_v11 }
  0x22   :  { %452 = vmatpush.bf16.msra.mxu2 %v431_v39 }
  0x24   :  { %205 = vmatpush.bf16.msra.mxu1 %v422_v12  ;;  %445 = vmatpush.bf16.msra.mxu3 %v422_v12 }
  0x26   :  { %453 = vmatpush.bf16.msra.mxu2 %v430_v40 }
  0x28   :  { %287 = vmatpush.bf16.msrb.mxu1 %v437_v23 }
  0x29   :  { %351 = vmatmul.msk.bf16.gmra.mxu0 %vm96_vm0, %v419_v7 }
  0x2c   :  { %288 = vmatpush.bf16.msrb.mxu1 %v436_v24 }
  0x30   :  { %289 = vmatpush.bf16.msrb.mxu1 %v435_v26 }
  0x34   :  { %290 = vmatpush.bf16.msrb.mxu1 %v434_v27 }
  0x38   :  { %291 = vmatpush.bf16.msrb.mxu1 %v433_v32 }
  0x39   :  { %352 = vmatmul.msk.bf16.gmra.mxu0 %vm96_vm0, %v420_v9 }
  0x3c   :  { %292 = vmatpush.bf16.msrb.mxu1 %v432_v38 }
  0x40   :  { %293 = vmatpush.bf16.msrb.mxu1 %v431_v39 }
  0x44   :  { %294 = vmatpush.bf16.msrb.mxu1 %v430_v40 }
  0x86   :  { %v118_v13 = vpop.f32.mrf.mxu0 }
  0x87   :  { %v138_v15 = vmax.f32 %v118_v13, 0.0 }
  0x8e   :  { %v120_v14 = vpop.f32.mrf.mxu0 }
  0x8f   :  { %v139_v16 = vmax.f32 %v120_v14, 0.0 }
  0x91   :  { %v146_v17 = vpack.c.bf16 %v139_v16, %v138_v15 }
  0x93   :  { %206 = vmatmul.bf16.vlgmr.msra.gmra.mxu1 %v146_v17 }
  0x96   :  { %v123_v18 = vpop.f32.mrf.mxu0 }
  0x97   :  { %v140_v20 = vmax.f32 %v123_v18, 0.0 }
  0x9e   :  { %v125_v19 = vpop.f32.mrf.mxu0 }
  0x9f   :  { %v141_v21 = vmax.f32 %v125_v19, 0.0 }
  0xa1   :  { %v147_v22 = vpack.c.bf16 %v141_v21, %v140_v20 }
  0xa3   :  { %211 = vmatmul.bf16.vlgmr.msra.gmra.mxu3 %v147_v22 }
  0xa6   :  { %v128_v25 = vpop.f32.mrf.mxu0 }
  0xa7   :  { %v142_v29 = vmax.f32 %v128_v25, 0.0 }
  0xae   :  { %v130_v28 = vpop.f32.mrf.mxu0 }
  0xaf   :  { %v143_v30 = vmax.f32 %v130_v28, 0.0 }
  0xb1   :  { %v148_v31 = vpack.c.bf16 %v143_v30, %v142_v29 }
  0xb3   :  { %216 = vmatmul.bf16.gmra.mxu3 %v148_v31 }
  0xb6   :  { %v133_v33 = vpop.f32.mrf.mxu0 }
  0xb7   :  { %v144_v35 = vmax.f32 %v133_v33, 0.0 }
  0xbe   :  { %v135_v34 = vpop.f32.mrf.mxu0 }
  0xbf   :  { %v145_v36 = vmax.f32 %v135_v34, 0.0 }
  0xc1   :  { %v149_v37 = vpack.c.bf16 %v145_v36, %v144_v35 }
  0xc3   :  { %221 = vmatmul.bf16.gmra.mxu3 %v149_v37 }
 0x110   :  { %v207_v41 = vpop.f32.mrf.mxu1 }
 0x111   :  { %v227_v43 = vmax.f32 %v207_v41, 0.0 }
 0x118   :  { %v209_v42 = vpop.f32.mrf.mxu1 }
 0x119   :  { %v228_v44 = vmax.f32 %v209_v42, 0.0 }
 0x11b   :  { %v235_v45 = vpack.c.bf16 %v228_v44, %v227_v43 }
 0x11d   :  { %295 = vmatmul.bf16.vlgmr.msrb.gmra.mxu1 %v235_v45 }
 0x126   :  { %v212_v46 = vpop.f32.mrf.mxu3 }
 0x127   :  { %v229_v48 = vmax.f32 %v212_v46, 0.0 }
 0x12e   :  { %v214_v47 = vpop.f32.mrf.mxu3 }
 0x12f   :  { %v230_v49 = vmax.f32 %v214_v47, 0.0 }
 0x131   :  { %v236_v50 = vpack.c.bf16 %v230_v49, %v229_v48 }
 0x133   :  { %300 = vmatmul.bf16.vlgmr.msra.gmra.mxu2 %v236_v50 }
 0x136   :  { %v217_v51 = vpop.f32.mrf.mxu3 }
 0x137   :  { %v231_v53 = vmax.f32 %v217_v51, 0.0 }
 0x13e   :  { %v219_v52 = vpop.f32.mrf.mxu3 }
 0x13f   :  { %v232_v54 = vmax.f32 %v219_v52, 0.0 }
 0x141   :  { %v237_v55 = vpack.c.bf16 %v232_v54, %v231_v53 }
 0x143   :  { %305 = vmatmul.bf16.gmra.mxu2 %v237_v55 }
 0x146   :  { %v222_v56 = vpop.f32.mrf.mxu3 }
 0x147   :  { %v233_v58 = vmax.f32 %v222_v56, 0.0 }
 0x14e   :  { %v224_v57 = vpop.f32.mrf.mxu3 }
 0x14f   :  { %v234_v59 = vmax.f32 %v224_v57, 0.0 }
 0x151   :  { %v238_v60 = vpack.c.bf16 %v234_v59, %v233_v58 }
 0x153   :  { %310 = vmatmul.bf16.gmra.mxu2 %v238_v60 }
 0x19a   :  { %v296_v61 = vpop.f32.mrf.mxu1 }
 0x19b   :  { %316 = vst [vmem:[%s546_s2] sm:$0xff] %v296_v61 }
 0x1a2   :  { %v298_v62 = vpop.f32.mrf.mxu1 }
 0x1a3   :  { %317 = vst [vmem:[%s546_s2 + $0x8] sm:$0xff] %v298_v62 }
 0x1b6   :  { %v301_v63 = vpop.f32.mrf.mxu2 }
 0x1b7   :  { %318 = vst [vmem:[%s546_s2 + $0x10] sm:$0xff] %v301_v63 }
 0x1be   :  { %v303_v0 = vpop.f32.mrf.mxu2 }
 0x1bf   :  { %319 = vst [vmem:[%s546_s2 + $0x18] sm:$0xff] %v303_v0 }
 0x1c6   :  { %v306_v1 = vpop.f32.mrf.mxu2 }
 0x1c7   :  { %320 = vst [vmem:[%s546_s2 + $0x20] sm:$0xff] %v306_v1 }
 0x1ce   :  { %v308_v2 = vpop.f32.mrf.mxu2 }
 0x1cf   :  { %321 = vst [vmem:[%s546_s2 + $0x28] sm:$0xff] %v308_v2 }
 0x1d6   :  { %v311_v3 = vpop.f32.mrf.mxu2 }
 0x1d7   :  { %322 = vst [vmem:[%s546_s2 + $0x30] sm:$0xff] %v311_v3 }
 0x1de   :  { %v313_v4 = vpop.f32.mrf.mxu2 }
 0x1df   :  { %323 = vst [vmem:[%s546_s2 + $0x38] sm:$0xff] %v313_v4 }
 0x1e0   :  { %328 = vsyncpa [#allocation3], 1 }

</bundles_post_ra>
